<compile_context>
chip_gen: v7x
topology: tpu7x:2x2x1
jax: 0.10.0
libtpu: 0.0.40
codegen_flags: <defaults>
</compile_context>

<pallas_src>
import math

import jax
import jax.numpy as jnp
from jax import lax
from jax.experimental import pallas as pl
from jax.experimental.pallas import tpu as pltpu


def _round_up(x, m):
    return (x + m - 1) // m * m


def _cdiv(a, b):
    return (a + b - 1) // b


def _lcm(a, b):
    return a * b // math.gcd(a, b)


def _reflect_conv_kernel(xm_ref, xh_ref, w_ref, b_ref, o_ref, xs_ref):
    """One (row-tile, Cout-tile) output block.

    xm_ref: (th, Wo, C3)          main rows of kw-folded, reflection-padded input
    xh_ref: (KH-1, Wo, C3)        bottom halo rows of the same array
    w_ref:  (KH, C3, tn)          per-kh folded weights
    b_ref:  (1, tn)      f32      bias (Cout zero-padded)
    o_ref:  (th*Wo, tn)  f32      output tile (lane-dense store)
    xs_ref: ((th+KH-1)*Wo, C3)    VMEM scratch: main + halo stitched contiguously
    """
    th, wo, c3 = xm_ref.shape
    halo = xh_ref.shape[0]
    n_kh = w_ref.shape[0]
    mw = th * wo

    # Stitch main + halo rows into one row-major scratch so every kh-shifted
    # view is a static-offset slice (offsets are multiples of Wo >= 16 ->
    # no relayout, no extra concatenate temporaries).
    xs_ref[0:mw, :] = xm_ref[...].reshape(mw, c3)
    xs_ref[mw:mw + halo * wo, :] = xh_ref[...].reshape(halo * wo, c3)

    # KH wide-K MXU dots accumulated in f32.
    acc = jnp.dot(xs_ref[0:mw, :], w_ref[0], preferred_element_type=jnp.float32)
    for kh in range(1, n_kh):
        acc = acc + jnp.dot(xs_ref[kh * wo:kh * wo + mw, :], w_ref[kh],
                            preferred_element_type=jnp.float32)
    o_ref[...] = acc + b_ref[...]


def _pick_row_tile(H, Wo, C3, tn, KH, c_bytes, budget_bytes):
    """Largest row-tile height th (multiple of lcm(8, KH-1)) within the VMEM budget."""
    halo = KH - 1
    th_align = _lcm(8, halo)
    fixed = 2 * (halo * Wo * C3 * c_bytes)       # halo input blocks (2x buffered)
    fixed += 2 * (KH * C3 * tn * c_bytes)        # weight block (2x buffered)
    fixed += 2 * (tn * 4)                        # bias block
    fixed += halo * Wo * C3 * c_bytes            # scratch halo rows
    per_row = 2 * (Wo * C3 * c_bytes)            # x main rows (2x buffered)
    per_row += 2 * (Wo * tn * 4)                 # f32 output rows (2x buffered)
    per_row += Wo * C3 * c_bytes                 # scratch rows
    avail = max(budget_bytes - fixed, per_row * th_align)
    th = (avail // per_row) // th_align * th_align
    th = int(max(th_align, min(th, _round_up(H, th_align))))
    return th, th_align


def reflection_padding_conv(x_nchw, weight, bias, *, kernel_size=3, stride=1,
                            groups=1, compute_dtype=jnp.bfloat16,
                            vmem_budget_bytes=20 * 1024 * 1024,
                            out_layout="NCHW"):
    """Reflection-pad + Conv2d forward (PyTorch ReflectionPaddingConv semantics).

    x_nchw: (B, Cin, H, W) f32; weight: (Cout, Cin, K, K) f32; bias: (Cout,) f32.
    Returns (B, Cout, H, W) f32 (or NHWC if out_layout="NHWC", which skips the
    final transpose pass for layout-flexible consumers).
    """
    assert stride == 1, "stride=1 path only (module default)"
    assert groups == 1, "groups=1 path only (module default)"
    # TODO(synk): depthwise (groups>1), stride>1 and kernel_size==1 paths not implemented.
    assert kernel_size % 2 == 1 and kernel_size >= 3

    B, Cin, H, W = x_nchw.shape
    Cout, Cin_w, KH, KW = weight.shape
    assert Cin_w == Cin and KH == kernel_size and KW == kernel_size
    pad = (kernel_size - 1) // 2
    assert pad < H and pad < W, "ReflectionPad2d requires pad < spatial dims"
    halo = KH - 1                                   # bottom halo rows per tile

    cdt = jnp.dtype(compute_dtype)
    c_bytes = cdt.itemsize

    # ---- glue (plain JAX, one pass over the input): layout + reflection pad
    #      + kw-tap fold (KW-x channel expansion only; kh handled in-kernel). --
    x = jnp.transpose(x_nchw, (0, 2, 3, 1))                         # (B, H, W, Cin)
    x = jnp.pad(x, ((0, 0), (pad, pad), (pad, pad), (0, 0)), mode="reflect")
    x3 = jnp.concatenate([x[:, :, kw:kw + W, :] for kw in range(KW)],
                         axis=-1).astype(cdt)                       # (B, H+2p, W, KW*Cin)
    C3 = KW * Cin

    # ---- Cout padding: lane-dense stores; 256-aligned for v6e/v7x MXU. -------
    CPn = _round_up(Cout, 128) if Cout <= 128 else _round_up(Cout, 256)

    # ---- weight residency: collapse Cout grid axis when weights fit in VMEM. -
    w_bytes = KH * C3 * CPn * c_bytes
    tn = CPn if w_bytes <= 6 * 1024 * 1024 else 256
    nJ = CPn // tn
    # TODO(synk): very large Cin (K*tn weights >> VMEM) would also want a K grid axis.

    # ---- row tiling from an explicit VMEM budget. -----------------------------
    Wo = _round_up(W, 16)        # 16-aligned: bf16 reshapes/slices need no relayout
    th, th_align = _pick_row_tile(H, Wo, C3, tn, KH, c_bytes, vmem_budget_bytes)
    # v7x has 2 TensorCores: keep >= 2 parallel grid steps when possible.
    if B * _cdiv(H, th) * nJ < 2:
        th_half = _round_up(_cdiv(H, 2), th_align)
        if th_half < th:
            th = th_half
    H_pad = _round_up(H, th)
    nI = H_pad // th

    # Zero-pad rows/cols so every block is full; garbage rows/cols only feed
    # garbage output rows/cols that are sliced off below.
    x3 = jnp.pad(x3, ((0, 0), (0, (H_pad + halo) - (H + halo)),
                      (0, Wo - W), (0, 0)))                         # (B, H_pad+halo, Wo, C3)

    # ---- folded weights / bias: w3[kh, kw*Cin+ci, co] = weight[co, ci, kh, kw].
    w3 = jnp.transpose(weight, (2, 3, 1, 0)).reshape(KH, C3, Cout)
    w3 = jnp.pad(w3, ((0, 0), (0, 0), (0, CPn - Cout))).astype(cdt)
    b_row = jnp.pad(bias.astype(jnp.float32), (0, CPn - Cout)).reshape(1, CPn)

    grid = (nJ, B, nI)   # Cout-tile outermost -> weight block resident across (b, i)

    out2d = pl.pallas_call(
        _reflect_conv_kernel,
        out_shape=jax.ShapeDtypeStruct((B * H_pad * Wo, CPn), jnp.float32),
        grid=grid,
        in_specs=[
            # main rows of the row tile
            pl.BlockSpec((None, th, Wo, C3), lambda j, b, i: (b, i, 0, 0)),
            # (KH-1)-row bottom halo of the same array
            pl.BlockSpec((None, halo, Wo, C3),
                         lambda j, b, i: (b, (i + 1) * (th // halo), 0, 0)),
            # folded weights (resident: index depends only on outermost j)
            pl.BlockSpec((KH, C3, tn), lambda j, b, i: (0, 0, j)),
            # bias
            pl.BlockSpec((1, tn), lambda j, b, i: (0, j)),
        ],
        out_specs=pl.BlockSpec((th * Wo, tn), lambda j, b, i: (b * nI + i, j)),
        scratch_shapes=[pltpu.VMEM(((th + halo) * Wo, C3), cdt)],
        compiler_params=pltpu.CompilerParams(
            dimension_semantics=("parallel", "parallel", "parallel"),
            vmem_limit_bytes=32 * 1024 * 1024),
    )(x3, x3, w3, b_row)

    out = out2d.reshape(B, H_pad, Wo, CPn)[:, :H, :W, :Cout]        # NHWC
    if out_layout == "NHWC":
        return out
    return jnp.transpose(out, (0, 3, 1, 2))                          # NCHW


def _reference(x_nchw, weight, bias, kernel_size=3):
    """Pure-JAX reference (reflection pad + lax conv) for verification."""
    pad = (kernel_size - 1) // 2
    x_pad = jnp.pad(x_nchw, ((0, 0), (0, 0), (pad, pad), (pad, pad)),
                    mode="reflect")
    out = lax.conv_general_dilated(
        x_pad, weight, window_strides=(1, 1), padding="VALID",
        dimension_numbers=("NCHW", "OIHW", "NCHW"),
        precision=lax.Precision.HIGHEST,
    )
    return out + bias.reshape(1, -1, 1, 1)


if __name__ == "__main__":
    key = jax.random.PRNGKey(0)

    def _make(key, B, Cin, H, W, Cout, Ksz):
        kx, kw, kb = jax.random.split(key, 3)
        x = jax.random.normal(kx, (B, Cin, H, W), dtype=jnp.float32)
        fan_in = Cin * Ksz * Ksz
        bound = 1.0 / (fan_in ** 0.5)
        weight = jax.random.uniform(kw, (Cout, Cin, Ksz, Ksz),
                                    minval=-bound, maxval=bound, dtype=jnp.float32)
        bias = jax.random.uniform(kb, (Cout,),
                                  minval=-bound, maxval=bound, dtype=jnp.float32)
        return x, weight, bias

    configs = [
        dict(B=2, Cin=4, H=16, W=16, Cout=8, Ksz=3),   # module-default toy shape
        dict(B=1, Cin=3, H=10, W=12, Cout=5, Ksz=3),   # exercises row/col padding paths
    ]
    keys = jax.random.split(key, len(configs))
    for cfg, k in zip(configs, keys):
        x, weight, bias = _make(k, **cfg)
        out = reflection_padding_conv(x, weight, bias, kernel_size=cfg["Ksz"])
        out = jax.block_until_ready(out)
        assert out.shape == (cfg["B"], cfg["Cout"], cfg["H"], cfg["W"]), out.shape

        # Reference computed on the same bf16-quantized operands the kernel
        # feeds the MXU (precision choice documented in the wrapper docstring;
        # f32 accumulation in both paths).
        xq = x.astype(jnp.bfloat16).astype(jnp.float32)
        wq = weight.astype(jnp.bfloat16).astype(jnp.float32)
        ref = _reference(xq, wq, bias, kernel_size=cfg["Ksz"])
        assert jnp.allclose(out, ref, atol=1e-3, rtol=1e-3), (
            "mismatch vs reference; max abs err = "
            f"{float(jnp.max(jnp.abs(out - ref)))}")

    print("KERNEL_OK")
</pallas_src>

<mosaic_0001>
module attributes {stable_mosaic.version = 11 : i64} {
  func.func @_reflect_conv_kernel(%arg0: i32, %arg1: i32, %arg2: i32, %arg3: memref<1x16x16x12xbf16, #tpu.memory_space<vmem>>, %arg4: memref<1x2x16x12xbf16, #tpu.memory_space<vmem>>, %arg5: memref<3x12x128xbf16, #tpu.memory_space<vmem>>, %arg6: memref<1x128xf32, #tpu.memory_space<vmem>>, %arg7: memref<256x128xf32, #tpu.memory_space<vmem>>, %arg8: memref<288x12xbf16, #tpu.memory_space<vmem>>) attributes {dimension_semantics = [#tpu.dimension_semantics<parallel>, #tpu.dimension_semantics<parallel>, #tpu.dimension_semantics<parallel>], iteration_bounds = array<i64: 1, 2, 1>, scalar_prefetch = 0 : i64, scratch_operands = 1 : i64, tpu.core_type = #tpu.core_type<tc>, window_params = [{transform_indices = @transform_0, window_bounds = array<i64: 1, 16, 16, 12>}, {transform_indices = @transform_1, window_bounds = array<i64: 1, 2, 16, 12>}, {transform_indices = @transform_2, window_bounds = array<i64: 3, 12, 128>}, {transform_indices = @transform_3, window_bounds = array<i64: 1, 128>}, {transform_indices = @transform_4, window_bounds = array<i64: 256, 128>}]} {
    %c0 = arith.constant 0 : index
    %c0_0 = arith.constant 0 : index
    %c0_1 = arith.constant 0 : index
    %c0_2 = arith.constant 0 : index
    %0 = vector.load %arg3[%c0, %c0_0, %c0_1, %c0_2] : memref<1x16x16x12xbf16, #tpu.memory_space<vmem>>, vector<1x16x16x12xbf16>
    %1 = vector.shape_cast %0 : vector<1x16x16x12xbf16> to vector<16x16x12xbf16>
    %2 = vector.shape_cast %1 : vector<16x16x12xbf16> to vector<256x12xbf16>
    %c0_3 = arith.constant 0 : index
    %c0_4 = arith.constant 0 : index
    %3 = vector.load %arg8[%c0_3, %c0_4] : memref<288x12xbf16, #tpu.memory_space<vmem>>, vector<256x12xbf16>
    tpu.vector_store %arg8[%c0_3, %c0_4], %2 {strides = array<i32>} : memref<288x12xbf16, #tpu.memory_space<vmem>>, vector<256x12xbf16>,
    %c0_5 = arith.constant 0 : index
    %c0_6 = arith.constant 0 : index
    %c0_7 = arith.constant 0 : index
    %c0_8 = arith.constant 0 : index
    %4 = vector.load %arg4[%c0_5, %c0_6, %c0_7, %c0_8] : memref<1x2x16x12xbf16, #tpu.memory_space<vmem>>, vector<1x2x16x12xbf16>
    %5 = vector.shape_cast %4 : vector<1x2x16x12xbf16> to vector<2x16x12xbf16>
    %6 = vector.shape_cast %5 : vector<2x16x12xbf16> to vector<32x12xbf16>
    %c256 = arith.constant 256 : index
    %c0_9 = arith.constant 0 : index
    %7 = vector.load %arg8[%c256, %c0_9] : memref<288x12xbf16, #tpu.memory_space<vmem>>, vector<32x12xbf16>
    tpu.vector_store %arg8[%c256, %c0_9], %6 {strides = array<i32>} : memref<288x12xbf16, #tpu.memory_space<vmem>>, vector<32x12xbf16>,
    %c0_10 = arith.constant 0 : index
    %c0_11 = arith.constant 0 : index
    %8 = vector.load %arg8[%c0_10, %c0_11] : memref<288x12xbf16, #tpu.memory_space<vmem>>, vector<256x12xbf16>
    %c0_12 = arith.constant 0 : index
    %c0_13 = arith.constant 0 : index
    %c0_14 = arith.constant 0 : index
    %9 = vector.load %arg5[%c0_12, %c0_13, %c0_14] : memref<3x12x128xbf16, #tpu.memory_space<vmem>>, vector<1x12x128xbf16>
    %10 = vector.shape_cast %9 : vector<1x12x128xbf16> to vector<12x128xbf16>
    %cst = arith.constant dense<0.000000e+00> : vector<256x128xf32>
    %11 = tpu.matmul %8, %10, %cst {dimension_numbers = #tpu.dot_dimension_numbers<[1], [0], [0], [1], [0, 0, 1, 1], [], []>} : vector<256x12xbf16>, vector<12x128xbf16>, vector<256x128xf32> -> vector<256x128xf32>
    %c16 = arith.constant 16 : index
    %c0_15 = arith.constant 0 : index
    %12 = vector.load %arg8[%c16, %c0_15] : memref<288x12xbf16, #tpu.memory_space<vmem>>, vector<256x12xbf16>
    %c1 = arith.constant 1 : index
    %c0_16 = arith.constant 0 : index
    %c0_17 = arith.constant 0 : index
    %13 = vector.load %arg5[%c1, %c0_16, %c0_17] : memref<3x12x128xbf16, #tpu.memory_space<vmem>>, vector<1x12x128xbf16>
    %14 = vector.shape_cast %13 : vector<1x12x128xbf16> to vector<12x128xbf16>
    %cst_18 = arith.constant dense<0.000000e+00> : vector<256x128xf32>
    %15 = tpu.matmul %12, %14, %cst_18 {dimension_numbers = #tpu.dot_dimension_numbers<[1], [0], [0], [1], [0, 0, 1, 1], [], []>} : vector<256x12xbf16>, vector<12x128xbf16>, vector<256x128xf32> -> vector<256x128xf32>
    %16 = arith.addf %11, %15 : vector<256x128xf32>
    %c32 = arith.constant 32 : index
    %c0_19 = arith.constant 0 : index
    %17 = vector.load %arg8[%c32, %c0_19] : memref<288x12xbf16, #tpu.memory_space<vmem>>, vector<256x12xbf16>
    %c2 = arith.constant 2 : index
    %c0_20 = arith.constant 0 : index
    %c0_21 = arith.constant 0 : index
    %18 = vector.load %arg5[%c2, %c0_20, %c0_21] : memref<3x12x128xbf16, #tpu.memory_space<vmem>>, vector<1x12x128xbf16>
    %19 = vector.shape_cast %18 : vector<1x12x128xbf16> to vector<12x128xbf16>
    %cst_22 = arith.constant dense<0.000000e+00> : vector<256x128xf32>
    %20 = tpu.matmul %17, %19, %cst_22 {dimension_numbers = #tpu.dot_dimension_numbers<[1], [0], [0], [1], [0, 0, 1, 1], [], []>} : vector<256x12xbf16>, vector<12x128xbf16>, vector<256x128xf32> -> vector<256x128xf32>
    %21 = arith.addf %16, %20 : vector<256x128xf32>
    %c0_23 = arith.constant 0 : index
    %c0_24 = arith.constant 0 : index
    %22 = vector.load %arg6[%c0_23, %c0_24] : memref<1x128xf32, #tpu.memory_space<vmem>>, vector<1x128xf32>
    %23 = vector.broadcast %22 : vector<1x128xf32> to vector<256x128xf32>
    %24 = arith.addf %21, %23 : vector<256x128xf32>
    %c0_25 = arith.constant 0 : index
    %c0_26 = arith.constant 0 : index
    %25 = vector.load %arg7[%c0_25, %c0_26] : memref<256x128xf32, #tpu.memory_space<vmem>>, vector<256x128xf32>
    tpu.vector_store %arg7[%c0_25, %c0_26], %24 {strides = array<i32>} : memref<256x128xf32, #tpu.memory_space<vmem>>, vector<256x128xf32>,
    return
  }
  func.func @transform_0(%arg0: i32, %arg1: i32, %arg2: i32) -> (i32, i32, i32, i32) {
    %c0_i32 = arith.constant 0 : i32
    %c0_i32_0 = arith.constant 0 : i32
    %c0_i32_1 = arith.constant 0 : i32
    return %arg1, %arg2, %c0_i32, %c0_i32_0 : i32, i32, i32, i32
  }
  func.func @transform_1(%arg0: i32, %arg1: i32, %arg2: i32) -> (i32, i32, i32, i32) {
    %c1_i32 = arith.constant 1 : i32
    %0 = arith.addi %arg2, %c1_i32 : i32
    %c8_i32 = arith.constant 8 : i32
    %1 = arith.muli %0, %c8_i32 : i32
    %c0_i32 = arith.constant 0 : i32
    %c0_i32_0 = arith.constant 0 : i32
    %c0_i32_1 = arith.constant 0 : i32
    return %arg1, %1, %c0_i32, %c0_i32_0 : i32, i32, i32, i32
  }
  func.func @transform_2(%arg0: i32, %arg1: i32, %arg2: i32) -> (i32, i32, i32) {
    %c0_i32 = arith.constant 0 : i32
    %c0_i32_0 = arith.constant 0 : i32
    %c0_i32_1 = arith.constant 0 : i32
    return %c0_i32, %c0_i32_0, %arg0 : i32, i32, i32
  }
  func.func @transform_3(%arg0: i32, %arg1: i32, %arg2: i32) -> (i32, i32) {
    %c0_i32 = arith.constant 0 : i32
    %c0_i32_0 = arith.constant 0 : i32
    return %c0_i32, %arg0 : i32, i32
  }
  func.func @transform_4(%arg0: i32, %arg1: i32, %arg2: i32) -> (i32, i32) {
    %c1_i32 = arith.constant 1 : i32
    %0 = arith.muli %arg1, %c1_i32 : i32
    %1 = arith.addi %0, %arg2 : i32
    %c0_i32 = arith.constant 0 : i32
    return %1, %arg0 : i32, i32
  }
}

</mosaic_0001>

<bundles_post_ra>
// kernel: tpu_custom_call.1
= control target key start
LH: loop header
LB: loop body
LE: loop exit
PB: predicated region body
PF: predicated region fallthrough
CT: control target
= control target key end

     0   :  { %9 = vsyncpa [#allocation4], 0  ;;  %s2218_s0 = inlined_call_operand.vmem [shape: bf16[2,18,16,12], index: 0, kind: input, shape index: {}]   ;;  %s2219_s1 = inlined_call_operand.vmem [shape: bf16[2,18,16,12], index: 1, kind: input, shape index: {}]   ;;  %s2220_s2 = inlined_call_operand.vmem [shape: bf16[3,12,128], index: 2, kind: input, shape index: {}]   ;;  %s2221_s3 = inlined_call_operand.vmem [shape: f32[1,128], index: 3, kind: input, shape index: {}]   ;;  %s2222_s4 = inlined_call_operand.hbm [shape: f32[512,128], index: 4, kind: output, shape index: {}]  }
   0x1   :  { %11 = vsyncpa [#allocation4 + $0x1], 0  ;;  %s1917_s15 = smov 0   ;;  %s1919_s16 = smov 0  }
   0x2   :  { %s1921_s17 = smov 0   ;;  %s1923_s18 = smov 0  }
   0x3   :  { %s1925_s19 = smov 0   ;;  %s1927_s20 = smov 0  }
   0x4 LB: > { %s1413_s21 = sadd.s32 4294967295, %s1887_s20   ;;  %s1414_s22 = sadd.s32 4294967294, %s1887_s20   ;;  %s1887_s20 = sphi %s1927_s20, %s17_s20   ;;  %s1883_s19 = sphi %s1925_s19, %s2229_s19   ;;  %s1879_s18 = sphi %s1923_s18, %s2228_s18   ;;  %s1875_s17 = sphi %s1921_s17, %s2227_s17   ;;  %s1871_s16 = sphi %s1919_s16, %s2226_s16   ;;  %s1867_s15 = sphi %s1917_s15, %s2225_s15  }
   0x5   : > { %s32_s23 = sadd.s32 1, %s1883_s19  ;;  %s159_s24 = sadd.s32 1, %s1875_s17 }
   0x6   : > { %p34_p0 = scmp.ge.s32.totalorder %s32_s23, 2  ;;  %p169_p1 = scmp.ne.s32.totalorder %s1875_s17, %s1871_s16 }
   0x7   : > { %p170_p2 = scmp.eq.s32.totalorder %s1413_s21, 1  ;;  %p175_p3 = scmp.ne.s32.totalorder %s1871_s16, %s1867_s15 }
   0x8   : > { %s2231_s23 = smov (%p34_p0, %s32_s23), 0  ;;  %p176_p5 = scmp.eq.s32.totalorder %s1414_s22, 1 }
   0x9   : > { %p1957_p4 = por %p170_p2, %p169_p1  ;;  %s154_s26 = ssub.s32 %s1883_s19, %s2231_s23 }
   0xa   : > { %p1419_p6 = scmp.ge.s32.totalorder %s1887_s20, 1  ;;  %p157_p7 = scmp.eq.s32.totalorder %s154_s26, 0 }
   0xb   : > { %p1964_p8 = por %p176_p5, %p175_p3  ;;  %p249_p9 = scmp.lt.s32.totalorder %s1887_s20, 3 }
   0xc   : > { %s1970_s28 = scalar_select %p157_p7, %s1875_s17, %s159_s24  }
   0xd   : > { %p250_p10 = pnand %p1419_p6, %p249_p9 }
   0xe   : > { %v1788_v0 = vld [vmem:[%s2220_s2 + $0x8] sm:$0x3f] (!%p250_p10)   ;;  %vm588_vm0 = vcmask (!%p250_p10), 1045504   ;;  %p310_p11 = scmp.lt.s32.totalorder (!%p250_p10), %s1879_s18, 1  ;;  %v1789_v1 = vld [vmem:[%s2220_s2] sm:$0x3f] (!%p250_p10)  }
   0xf   : > { %253 = sbr.rel (%p250_p10) target bundleno = 359 (0x167), region = 36  ;;  %1724 = vmatprep.subr.msk.bf16.mxu1 (!%p250_p10), %vm588_vm0, %v1788_v0  ;;  %v590_v2 = vsel (!%p250_p10), %vm588_vm0, %v1788_v0, 0  ;;  %v1792_v3 = vld [vmem:[%s2220_s2 + $0x10] sm:$0x3f] (!%p250_p10)   ;;  %1725 = vmatprep.subr.msk.bf16.mxu0 (!%p250_p10), %vm588_vm0, %v1789_v1  ;;  %v762_v4 = vsel (!%p250_p10), %vm588_vm0, %v1789_v1, 0  ;;  %vm478_vm1 = vcmask (!%p250_p10), 97280  }
  0x10   : > { %1557 = vmatpush3.bf16.msra.mxu1 (!%p250_p10), %v590_v2  ;;  %1591 = vmatpush3.bf16.msra.mxu0 (!%p250_p10), %v762_v4  ;;  %v998_v16 = vsel (!%p250_p10), %vm588_vm0, %v1792_v3, 0  ;;  %s301_s26 = sand.u32 (!%p250_p10), 1, %s1871_s16   ;;  %v2093_v59 = vld [vmem:[%s2221_s3] ss:$0 sm:$0xff] (!%p250_p10) }
  0x11   : > { %1726 = vmatprep.subr.msk.bf16.mxu1 (!%p250_p10), %vm588_vm0, %v1789_v1  ;;  %1727 = vmatprep.subr.msk.bf16.mxu0 (!%p250_p10), %vm588_vm0, %v1792_v3  ;;  %s1420_s29 = sshll.u32 (!%p250_p10), %s301_s26, 8 }
  0x12   : > { %s2097_s6 = scalar_lea.vmem (!%p250_p10), [#allocation3], %s1420_s29 }
  0x13   : > { %s1280_s8 = sshll.u32 (!%p250_p10), %s2097_s6, 4  ;;  %s2164_s8 = int_to_ptr.vmem [resolvable:$true] %s1280_s8 }
  0x14   : > { %s1809_s12 = scalar_lea.vmem (!%p250_p10), %s2164_s8, 4096 }
  0x15   : > { %p1810_p12 = scmp.ne.s32.totalorder (!%p250_p10), %s2164_s8, %s1809_s12 }
  0x16   : > { %s1982_s7 = scalar_select %p310_p11, %s1879_s18, 1 }
  0x17   : > { %p1811_p13 = pnand %p1810_p12, %p1957_p4 }
  0x18   : > { %s1728_s10 = smul.u32 144, %s1982_s7  ;;  %s1504_s7 = sshll.u32 %s1879_s18, 12 }
  0x19   : > { %s2162_s11 = scalar_lea.hbm %s2222_s4, %s1504_s7  ;;  %s2172_s18 = scalar_lea.sflag [#allocation4], %s301_s26 }
  0x1a   : > { %s1997_s13 = scalar_lea.vmem %s2218_s0, %s1728_s10  ;;  %s1503_s14 = sadd.s32 128, %s1728_s10 }
  0x1b   : > { %v1790_v5 = vld [vmem:[%s1997_s13 + $0x8] sm:$0xff]   ;;  %v1791_v6 = vld [vmem:[%s1997_s13] sm:$0xff]   ;;  %v1793_v7 = vld [vmem:[%s1997_s13 + $0x10] sm:$0xff]   ;;  %s336_s24 = scalar_lea.vmem %s2219_s1, %s1503_s14  ;;  %p1812_p0 = pneg %p1811_p13 }
  0x1c   : > { %480 = vst.msk [vmem:[#allocation2 + $0x8] sm:$0xff] %vm478_vm1, %v1790_v5  ;;  %479 = vst.msk [vmem:[#allocation2] sm:$0xff] %vm478_vm1, %v1791_v6  ;;  %v1794_v8 = vld [vmem:[%s1997_s13 + $0x18] sm:$0xff]   ;;  %v1795_v9 = vld [vmem:[%s1997_s13 + $0x20] sm:$0xff]  }
  0x1d   : > { %481 = vst.msk [vmem:[#allocation2 + $0x10] sm:$0xff] %vm478_vm1, %v1793_v7  ;;  %482 = vst.msk [vmem:[#allocation2 + $0x18] sm:$0xff] %vm478_vm1, %v1794_v8  ;;  %v1796_v10 = vld [vmem:[%s1997_s13 + $0x28] sm:$0xff]   ;;  %v1797_v11 = vld [vmem:[%s1997_s13 + $0x30] sm:$0xff]  }
  0x1e   : > { %483 = vst.msk [vmem:[#allocation2 + $0x20] sm:$0xff] %vm478_vm1, %v1795_v9  ;;  %484 = vst.msk [vmem:[#allocation2 + $0x28] sm:$0xff] %vm478_vm1, %v1796_v10  ;;  %v1798_v12 = vld [vmem:[%s1997_s13 + $0x38] sm:$0xff]   ;;  %v1799_v13 = vld [vmem:[%s1997_s13 + $0x40] sm:$0xff]  }
  0x1f   : > { %485 = vst.msk [vmem:[#allocation2 + $0x30] sm:$0xff] %vm478_vm1, %v1797_v11  ;;  %486 = vst.msk [vmem:[#allocation2 + $0x38] sm:$0xff] %vm478_vm1, %v1798_v12  ;;  %v1800_v17 = vld [vmem:[%s1997_s13 + $0x48] sm:$0xff]   ;;  %v1801_v19 = vld [vmem:[%s1997_s13 + $0x50] sm:$0xff]  }
  0x20   : > { %487 = vst.msk [vmem:[#allocation2 + $0x40] sm:$0xff] %vm478_vm1, %v1799_v13  ;;  %488 = vst.msk [vmem:[#allocation2 + $0x48] sm:$0xff] %vm478_vm1, %v1800_v17  ;;  %v1802_v21 = vld [vmem:[%s1997_s13 + $0x58] sm:$0xff]   ;;  %v1803_v22 = vld [vmem:[%s1997_s13 + $0x60] sm:$0xff]  }
  0x21   : > { %489 = vst.msk [vmem:[#allocation2 + $0x50] sm:$0xff] %vm478_vm1, %v1801_v19  ;;  %490 = vst.msk [vmem:[#allocation2 + $0x58] sm:$0xff] %vm478_vm1, %v1802_v21  ;;  %v1804_v24 = vld [vmem:[%s1997_s13 + $0x68] sm:$0xff]   ;;  %v1805_v26 = vld [vmem:[%s1997_s13 + $0x70] sm:$0xff]  }
  0x22   : > { %491 = vst.msk [vmem:[#allocation2 + $0x60] sm:$0xff] %vm478_vm1, %v1803_v22  ;;  %492 = vst.msk [vmem:[#allocation2 + $0x68] sm:$0xff] %vm478_vm1, %v1804_v24  ;;  %v1806_v27 = vld [vmem:[%s1997_s13 + $0x78] sm:$0xff]   ;;  %v1807_v28 = vld [vmem:[%s336_s24] sm:$0xff]   ;;  %s1889_s13 = smov [#allocation3]  }
  0x23   : > { %v514_v14 = vld [vmem:[#allocation2 + $0x8] sm:$0xff]  ;;  %v513_v15 = vld [vmem:[#allocation2] sm:$0xff]  ;;  %493 = vst.msk [vmem:[#allocation2 + $0x70] sm:$0xff] %vm478_vm1, %v1805_v26  ;;  %494 = vst.msk [vmem:[#allocation2 + $0x78] sm:$0xff] %vm478_vm1, %v1806_v27  ;;  %s1813_s14 = sshll.u32 %s1889_s13, 4  ;;  %s1814_s14 = int_to_ptr.vmem [resolvable:$false] %s1813_s14 }
  0x24   : > { %1558 = vmatprep.mubr.msk.bf16.mxu1 %vm478_vm1, %v514_v14  ;;  %1592 = vmatprep.mubr.msk.bf16.mxu0 %vm478_vm1, %v513_v15  ;;  %v515_v18 = vld [vmem:[#allocation2 + $0x10] sm:$0xff]  ;;  %v516_v20 = vld [vmem:[#allocation2 + $0x18] sm:$0xff]  ;;  %v1808_v29 = vld [vmem:[%s336_s24 + $0x8] sm:$0xff]   ;;  %511 = vst.msk [vmem:[#allocation2 + $0x80] sm:$0xff] %vm478_vm1, %v1807_v28  ;;  %s1815_s21 = scalar_lea.vmem %s1814_s14, 8192  ;;  %p1816_p1 = scmp.lt.s32.totalorder %s2164_s8, %s1814_s14 }
  0x25   : > { %1559 = vmatmul.mubr.msk.bf16.vlgmr.msra.gmra.mrb[0].mxu1 %vm478_vm1, %v515_v18  ;;  %1593 = vmatmul.mubr.msk.bf16.vlgmr.msra.gmra.mrb[0].mxu0 %vm478_vm1, %v514_v14  ;;  %v517_v23 = vld [vmem:[#allocation2 + $0x20] sm:$0xff]  ;;  %v518_v25 = vld [vmem:[#allocation2 + $0x28] sm:$0xff]  ;;  %512 = vst.msk [vmem:[#allocation2 + $0x88] sm:$0xff] %vm478_vm1, %v1808_v29  ;;  %p1817_p2 = scmp.lt.s32.totalorder %s1815_s21, %s1809_s12 }
  0x26   : > { %1659 = vmatpush3.bf16.msra.mxu1 %v762_v4  ;;  %1625 = vmatpush3.bf16.msra.mxu0 %v998_v16  ;;  %v519_v30 = vld [vmem:[#allocation2 + $0x30] sm:$0xff]  ;;  %v520_v31 = vld [vmem:[#allocation2 + $0x38] sm:$0xff] }
  0x27   : > { %1562 = vmatprep.mubr.msk.bf16.mxu1 %vm478_vm1, %v516_v20  ;;  %1596 = vmatprep.mubr.msk.bf16.mxu0 %vm478_vm1, %v515_v18  ;;  %v521_v32 = vld [vmem:[#allocation2 + $0x40] sm:$0xff]  ;;  %v522_v33 = vld [vmem:[#allocation2 + $0x48] sm:$0xff]  ;;  %p1818_p3 = por %p1817_p2, %p1816_p1 }
  0x28   : > { %v523_v34 = vld [vmem:[#allocation2 + $0x50] sm:$0xff]  ;;  %v524_v35 = vld [vmem:[#allocation2 + $0x58] sm:$0xff] }
  0x29   : > { %v525_v36 = vld [vmem:[#allocation2 + $0x60] sm:$0xff]  ;;  %v526_v37 = vld [vmem:[#allocation2 + $0x68] sm:$0xff]  ;;  %p1819_p5 = pnand %p1818_p3, %p1812_p0 }
  0x2a   : > { %v527_v38 = vld [vmem:[#allocation2 + $0x70] sm:$0xff]  ;;  %v528_v39 = vld [vmem:[#allocation2 + $0x78] sm:$0xff] }
  0x2b   : > { %v531_v40 = vld [vmem:[#allocation2 + $0x80] sm:$0xff] }
  0x2c   : > { %v940_v41 = vld [vmem:[#allocation2 + $0x88] sm:$0xff] }
  0x2d   : > { %1563 = vmatmul.mubr.msk.bf16.gmra.mrb[4].mxu1 %vm478_vm1, %v517_v23  ;;  %1597 = vmatmul.mubr.msk.bf16.gmra.mrb[4].mxu0 %vm478_vm1, %v516_v20 }
  0x2e   : > { %1566 = vmatprep.mubr.msk.bf16.mxu1 %vm478_vm1, %v518_v25  ;;  %1600 = vmatprep.mubr.msk.bf16.mxu0 %vm478_vm1, %v517_v23 }
  0x35   : > { %1567 = vmatmul.mubr.msk.bf16.gmra.mrb[8].mxu1 %vm478_vm1, %v519_v30  ;;  %1601 = vmatmul.mubr.msk.bf16.gmra.mrb[8].mxu0 %vm478_vm1, %v518_v25 }
  0x36   : > { %1570 = vmatprep.mubr.msk.bf16.mxu1 %vm478_vm1, %v520_v31  ;;  %1604 = vmatprep.mubr.msk.bf16.mxu0 %vm478_vm1, %v519_v30 }
  0x3d   : > { %1571 = vmatmul.mubr.msk.bf16.gmra.mrb[12].mxu1 %vm478_vm1, %v521_v32  ;;  %1605 = vmatmul.mubr.msk.bf16.gmra.mrb[12].mxu0 %vm478_vm1, %v520_v31 }
  0x3e   : > { %1574 = vmatprep.mubr.msk.bf16.mxu1 %vm478_vm1, %v522_v33  ;;  %1626 = vmatprep.mubr.msk.bf16.mxu0 %vm478_vm1, %v515_v18 }
  0x45   : > { %1575 = vmatmul.mubr.msk.bf16.gmra.mrb[16].mxu1 %vm478_vm1, %v523_v34  ;;  %1627 = vmatmul.mubr.msk.bf16.vlgmr.msra.gmra.mrb[0].mxu0 %vm478_vm1, %v516_v20 }
  0x46   : > { %1578 = vmatprep.mubr.msk.bf16.mxu1 %vm478_vm1, %v524_v35  ;;  %1630 = vmatprep.mubr.msk.bf16.mxu0 %vm478_vm1, %v517_v23 }
  0x4d   : > { %1579 = vmatmul.mubr.msk.bf16.gmra.mrb[20].mxu1 %vm478_vm1, %v525_v36  ;;  %1631 = vmatmul.mubr.msk.bf16.gmra.mrb[4].mxu0 %vm478_vm1, %v518_v25 }
  0x4e   : > { %1582 = vmatprep.mubr.msk.bf16.mxu1 %vm478_vm1, %v526_v37  ;;  %1634 = vmatprep.mubr.msk.bf16.mxu0 %vm478_vm1, %v519_v30 }
  0x55   : > { %1583 = vmatmul.mubr.msk.bf16.gmra.mrb[24].mxu1 %vm478_vm1, %v527_v38  ;;  %1635 = vmatmul.mubr.msk.bf16.gmra.mrb[8].mxu0 %vm478_vm1, %v520_v31 }
  0x56   : > { %1586 = vmatprep.mubr.msk.bf16.mxu1 %vm478_vm1, %v528_v39  ;;  %1638 = vmatprep.mubr.msk.bf16.mxu0 %vm478_vm1, %v521_v32 }
  0x5d   : > { %1587 = vmatmul.mubr.msk.bf16.gmra.mrb[28].mxu1 %vm478_vm1, %v531_v40  ;;  %1639 = vmatmul.mubr.msk.bf16.gmra.mrb[12].mxu0 %vm478_vm1, %v522_v33 }
  0x5e   : > { %1608 = vmatprep.mubr.msk.bf16.mxu1 %vm478_vm1, %v521_v32  ;;  %1642 = vmatprep.mubr.msk.bf16.mxu0 %vm478_vm1, %v523_v34 }
  0x65   : > { %1609 = vmatmul.mubr.msk.bf16.vlgmr.msra.gmra.mrb[16].mxu1 %vm478_vm1, %v522_v33  ;;  %1643 = vmatmul.mubr.msk.bf16.gmra.mrb[16].mxu0 %vm478_vm1, %v524_v35 }
  0x66   : > { %1612 = vmatprep.mubr.msk.bf16.mxu1 %vm478_vm1, %v523_v34  ;;  %1646 = vmatprep.mubr.msk.bf16.mxu0 %vm478_vm1, %v525_v36 }
  0x6d   : > { %1613 = vmatmul.mubr.msk.bf16.gmra.mrb[20].mxu1 %vm478_vm1, %v524_v35  ;;  %1647 = vmatmul.mubr.msk.bf16.gmra.mrb[20].mxu0 %vm478_vm1, %v526_v37 }
  0x6e   : > { %1616 = vmatprep.mubr.msk.bf16.mxu1 %vm478_vm1, %v525_v36  ;;  %1650 = vmatprep.mubr.msk.bf16.mxu0 %vm478_vm1, %v527_v38 }
  0x75   : > { %1617 = vmatmul.mubr.msk.bf16.gmra.mrb[24].mxu1 %vm478_vm1, %v526_v37  ;;  %1651 = vmatmul.mubr.msk.bf16.gmra.mrb[24].mxu0 %vm478_vm1, %v528_v39 }
  0x76   : > { %1620 = vmatprep.mubr.msk.bf16.mxu1 %vm478_vm1, %v527_v38  ;;  %1654 = vmatprep.mubr.msk.bf16.mxu0 %vm478_vm1, %v531_v40 }
  0x7d   : > { %1621 = vmatmul.mubr.msk.bf16.gmra.mrb[28].mxu1 %vm478_vm1, %v528_v39  ;;  %1655 = vmatmul.mubr.msk.bf16.gmra.mrb[28].mxu0 %vm478_vm1, %v940_v41 }
  0xf8   : > { %v1560_v42 = vpop.f32.mrb[0].mxu1 }
  0xf9   : > { %v626_v43 = vpop.f32.mrb[1].mxu1 }
  0xfa   : > { %v1561_v44 = vpop.f32.mrb[2].mxu1 }
  0xfb   : > { %v629_v45 = vpop.f32.mrb[3].mxu1 }
 0x100   : > { %v1564_v46 = vpop.f32.mrb[4].mxu1 }
 0x101   : > { %v642_v47 = vpop.f32.mrb[5].mxu1 }
 0x102   : > { %v1565_v48 = vpop.f32.mrb[6].mxu1 }
 0x103   : > { %v645_v49 = vpop.f32.mrb[7].mxu1 }
 0x108   : > { %v1568_v50 = vpop.f32.mrb[8].mxu1 }
 0x109   : > { %v658_v51 = vpop.f32.mrb[9].mxu1 }
 0x10a   : > { %v1569_v52 = vpop.f32.mrb[10].mxu1 }
 0x10b   : > { %v661_v53 = vpop.f32.mrb[11].mxu1 }
 0x110   : > { %v1572_v54 = vpop.f32.mrb[12].mxu1 }
 0x111   : > { %v674_v55 = vpop.f32.mrb[13].mxu1 }
 0x112   : > { %v1573_v56 = vpop.f32.mrb[14].mxu1 }
 0x113   : > { %v677_v57 = vpop.f32.mrb[15].mxu1 }
 0x118   : > { %v1628_v58 = vpop.f32.mrb[0].mxu0 }
 0x119   : > { %v1660_v60 = vadd.f32 %v1628_v58, %v1560_v42  ;;  %v1034_v61 = vpop.f32.mrb[1].mxu0 }
 0x11a   : > { %v1661_v62 = vadd.f32 %v1034_v61, %v626_v43  ;;  %v1629_v63 = vpop.f32.mrb[2].mxu0 }
 0x11b   : > { %v1202_v0 = vadd.f32 %v1660_v60, %v2093_v59  ;;  %v1662_v1 = vadd.f32 %v1629_v63, %v1561_v44  ;;  %v1037_v2 = vpop.f32.mrb[3].mxu0 }
 0x11c   : > { %v1200_v3 = vadd.f32 %v1661_v62, %v2093_v59  ;;  %v1663_v4 = vadd.f32 %v1037_v2, %v629_v45 }
 0x11d   : > { %1234 = vst [vmem:[%s2097_s6 + $0x10] sm:$0xff] %v1202_v0  ;;  %v1203_v5 = vadd.f32 %v1662_v1, %v2093_v59 }
 0x11e   : > { %1232 = vst [vmem:[%s2097_s6] sm:$0xff] %v1200_v3  ;;  %v1201_v6 = vadd.f32 %v1663_v4, %v2093_v59 }
 0x11f   : > { %1235 = vst [vmem:[%s2097_s6 + $0x18] sm:$0xff] %v1203_v5 }
 0x120   : > { %1233 = vst [vmem:[%s2097_s6 + $0x8] sm:$0xff] %v1201_v6  ;;  %v1632_v7 = vpop.f32.mrb[4].mxu0 }
 0x121   : > { %v1664_v8 = vadd.f32 %v1632_v7, %v1564_v46  ;;  %v1050_v9 = vpop.f32.mrb[5].mxu0 }
 0x122   : > { %v1665_v10 = vadd.f32 %v1050_v9, %v642_v47  ;;  %v1633_v11 = vpop.f32.mrb[6].mxu0 }
 0x123   : > { %v1206_v12 = vadd.f32 %v1664_v8, %v2093_v59  ;;  %v1666_v13 = vadd.f32 %v1633_v11, %v1565_v48  ;;  %v1053_v14 = vpop.f32.mrb[7].mxu0 }
 0x124   : > { %v1204_v15 = vadd.f32 %v1665_v10, %v2093_v59  ;;  %v1667_v16 = vadd.f32 %v1053_v14, %v645_v49 }
 0x125   : > { %1238 = vst [vmem:[%s2097_s6 + $0x30] sm:$0xff] %v1206_v12  ;;  %v1207_v17 = vadd.f32 %v1666_v13, %v2093_v59 }
 0x126   : > { %1236 = vst [vmem:[%s2097_s6 + $0x20] sm:$0xff] %v1204_v15  ;;  %v1205_v18 = vadd.f32 %v1667_v16, %v2093_v59 }
 0x127   : > { %1239 = vst [vmem:[%s2097_s6 + $0x38] sm:$0xff] %v1207_v17 }
 0x128   : > { %1237 = vst [vmem:[%s2097_s6 + $0x28] sm:$0xff] %v1205_v18  ;;  %v1636_v19 = vpop.f32.mrb[8].mxu0 }
 0x129   : > { %v1668_v20 = vadd.f32 %v1636_v19, %v1568_v50  ;;  %v1066_v21 = vpop.f32.mrb[9].mxu0 }
 0x12a   : > { %v1669_v22 = vadd.f32 %v1066_v21, %v658_v51  ;;  %v1637_v23 = vpop.f32.mrb[10].mxu0 }
 0x12b   : > { %v1210_v24 = vadd.f32 %v1668_v20, %v2093_v59  ;;  %v1670_v25 = vadd.f32 %v1637_v23, %v1569_v52  ;;  %v1069_v26 = vpop.f32.mrb[11].mxu0 }
 0x12c   : > { %v1208_v27 = vadd.f32 %v1669_v22, %v2093_v59  ;;  %v1671_v28 = vadd.f32 %v1069_v26, %v661_v53 }
 0x12d   : > { %1242 = vst [vmem:[%s2097_s6 + $0x50] sm:$0xff] %v1210_v24  ;;  %v1211_v29 = vadd.f32 %v1670_v25, %v2093_v59 }
 0x12e   : > { %1240 = vst [vmem:[%s2097_s6 + $0x40] sm:$0xff] %v1208_v27  ;;  %v1209_v30 = vadd.f32 %v1671_v28, %v2093_v59 }
 0x12f   : > { %1243 = vst [vmem:[%s2097_s6 + $0x58] sm:$0xff] %v1211_v29 }
 0x130   : > { %1241 = vst [vmem:[%s2097_s6 + $0x48] sm:$0xff] %v1209_v30  ;;  %v1640_v31 = vpop.f32.mrb[12].mxu0 }
 0x131   : > { %v1672_v32 = vadd.f32 %v1640_v31, %v1572_v54  ;;  %v1082_v33 = vpop.f32.mrb[13].mxu0 }
 0x132   : > { %v1673_v34 = vadd.f32 %v1082_v33, %v674_v55  ;;  %v1641_v35 = vpop.f32.mrb[14].mxu0 }
 0x133   : > { %v1214_v36 = vadd.f32 %v1672_v32, %v2093_v59  ;;  %v1674_v37 = vadd.f32 %v1641_v35, %v1573_v56  ;;  %v1085_v38 = vpop.f32.mrb[15].mxu0 }
 0x134   : > { %v1212_v39 = vadd.f32 %v1673_v34, %v2093_v59  ;;  %v1675_v40 = vadd.f32 %v1085_v38, %v677_v57 }
 0x135   : > { %1246 = vst [vmem:[%s2097_s6 + $0x70] sm:$0xff] %v1214_v36  ;;  %v1215_v41 = vadd.f32 %v1674_v37, %v2093_v59 }
 0x136   : > { %1244 = vst [vmem:[%s2097_s6 + $0x60] sm:$0xff] %v1212_v39  ;;  %v1213_v42 = vadd.f32 %v1675_v40, %v2093_v59 }
 0x137   : > { %1247 = vst [vmem:[%s2097_s6 + $0x78] sm:$0xff] %v1215_v41 }
 0x138   : > { %1245 = vst [vmem:[%s2097_s6 + $0x68] sm:$0xff] %v1213_v42  ;;  %v1610_v43 = vpop.f32.mrb[16].mxu1  ;;  %v1644_v44 = vpop.f32.mrb[16].mxu0 }
 0x139   : > { %v1676_v45 = vadd.f32 %v1644_v44, %v1610_v43  ;;  %v862_v46 = vpop.f32.mrb[17].mxu1  ;;  %v1098_v47 = vpop.f32.mrb[17].mxu0 }
 0x13a   : > { %v1677_v48 = vadd.f32 %v1098_v47, %v862_v46  ;;  %v1611_v49 = vpop.f32.mrb[18].mxu1  ;;  %v1645_v50 = vpop.f32.mrb[18].mxu0 }
 0x13b   : > { %v1218_v51 = vadd.f32 %v1676_v45, %v2093_v59  ;;  %v1678_v52 = vadd.f32 %v1645_v50, %v1611_v49  ;;  %v865_v53 = vpop.f32.mrb[19].mxu1  ;;  %v1101_v54 = vpop.f32.mrb[19].mxu0 }
 0x13c   : > { %v1216_v55 = vadd.f32 %v1677_v48, %v2093_v59  ;;  %v1679_v56 = vadd.f32 %v1101_v54, %v865_v53 }
 0x13d   : > { %1250 = vst [vmem:[%s2097_s6 + $0x90] sm:$0xff] %v1218_v51  ;;  %v1219_v57 = vadd.f32 %v1678_v52, %v2093_v59 }
 0x13e   : > { %1248 = vst [vmem:[%s2097_s6 + $0x80] sm:$0xff] %v1216_v55  ;;  %v1217_v58 = vadd.f32 %v1679_v56, %v2093_v59 }
 0x13f   : > { %1251 = vst [vmem:[%s2097_s6 + $0x98] sm:$0xff] %v1219_v57 }
 0x140   : > { %1249 = vst [vmem:[%s2097_s6 + $0x88] sm:$0xff] %v1217_v58  ;;  %v1614_v60 = vpop.f32.mrb[20].mxu1  ;;  %v1648_v61 = vpop.f32.mrb[20].mxu0 }
 0x141   : > { %v1680_v62 = vadd.f32 %v1648_v61, %v1614_v60  ;;  %v878_v63 = vpop.f32.mrb[21].mxu1  ;;  %v1114_v0 = vpop.f32.mrb[21].mxu0 }
 0x142   : > { %v1681_v1 = vadd.f32 %v1114_v0, %v878_v63  ;;  %v1615_v2 = vpop.f32.mrb[22].mxu1  ;;  %v1649_v3 = vpop.f32.mrb[22].mxu0 }
 0x143   : > { %v1222_v4 = vadd.f32 %v1680_v62, %v2093_v59  ;;  %v1682_v5 = vadd.f32 %v1649_v3, %v1615_v2  ;;  %v881_v6 = vpop.f32.mrb[23].mxu1  ;;  %v1117_v7 = vpop.f32.mrb[23].mxu0 }
 0x144   : > { %v1220_v8 = vadd.f32 %v1681_v1, %v2093_v59  ;;  %v1683_v9 = vadd.f32 %v1117_v7, %v881_v6 }
 0x145   : > { %1254 = vst [vmem:[%s2097_s6 + $0xb0] sm:$0xff] %v1222_v4  ;;  %v1223_v10 = vadd.f32 %v1682_v5, %v2093_v59 }
 0x146   : > { %1252 = vst [vmem:[%s2097_s6 + $0xa0] sm:$0xff] %v1220_v8  ;;  %v1221_v11 = vadd.f32 %v1683_v9, %v2093_v59 }
 0x147   : > { %1255 = vst [vmem:[%s2097_s6 + $0xb8] sm:$0xff] %v1223_v10 }
 0x148   : > { %1253 = vst [vmem:[%s2097_s6 + $0xa8] sm:$0xff] %v1221_v11  ;;  %v1618_v12 = vpop.f32.mrb[24].mxu1  ;;  %v1652_v13 = vpop.f32.mrb[24].mxu0 }
 0x149   : > { %v1684_v14 = vadd.f32 %v1652_v13, %v1618_v12  ;;  %v894_v15 = vpop.f32.mrb[25].mxu1  ;;  %v1130_v16 = vpop.f32.mrb[25].mxu0 }
 0x14a   : > { %v1685_v17 = vadd.f32 %v1130_v16, %v894_v15  ;;  %v1619_v18 = vpop.f32.mrb[26].mxu1  ;;  %v1653_v19 = vpop.f32.mrb[26].mxu0 }
 0x14b   : > { %v1226_v20 = vadd.f32 %v1684_v14, %v2093_v59  ;;  %v1686_v21 = vadd.f32 %v1653_v19, %v1619_v18  ;;  %v897_v22 = vpop.f32.mrb[27].mxu1  ;;  %v1133_v23 = vpop.f32.mrb[27].mxu0 }
 0x14c   : > { %v1224_v24 = vadd.f32 %v1685_v17, %v2093_v59  ;;  %v1687_v25 = vadd.f32 %v1133_v23, %v897_v22 }
 0x14d   : > { %1258 = vst [vmem:[%s2097_s6 + $0xd0] sm:$0xff] %v1226_v20  ;;  %v1227_v26 = vadd.f32 %v1686_v21, %v2093_v59 }
 0x14e   : > { %1256 = vst [vmem:[%s2097_s6 + $0xc0] sm:$0xff] %v1224_v24  ;;  %v1225_v27 = vadd.f32 %v1687_v25, %v2093_v59 }
 0x14f   : > { %1259 = vst [vmem:[%s2097_s6 + $0xd8] sm:$0xff] %v1227_v26 }
 0x150   : > { %1257 = vst [vmem:[%s2097_s6 + $0xc8] sm:$0xff] %v1225_v27  ;;  %v1622_v28 = vpop.f32.mrb[28].mxu1  ;;  %v1656_v29 = vpop.f32.mrb[28].mxu0 }
 0x151   : > { %v1688_v30 = vadd.f32 %v1656_v29, %v1622_v28  ;;  %v910_v31 = vpop.f32.mrb[29].mxu1  ;;  %v1146_v32 = vpop.f32.mrb[29].mxu0 }
 0x152   : > { %v1689_v33 = vadd.f32 %v1146_v32, %v910_v31  ;;  %v1623_v34 = vpop.f32.mrb[30].mxu1  ;;  %v1657_v35 = vpop.f32.mrb[30].mxu0 }
 0x153   : > { %v1230_v36 = vadd.f32 %v1688_v30, %v2093_v59  ;;  %v1690_v37 = vadd.f32 %v1657_v35, %v1623_v34  ;;  %v913_v38 = vpop.f32.mrb[31].mxu1  ;;  %v1149_v39 = vpop.f32.mrb[31].mxu0 }
 0x154   : > { %v1228_v40 = vadd.f32 %v1689_v33, %v2093_v59  ;;  %v1691_v41 = vadd.f32 %v1149_v39, %v913_v38 }
 0x155   : > { %1262 = vst [vmem:[%s2097_s6 + $0xf0] sm:$0xff] %v1230_v36  ;;  %v1231_v42 = vadd.f32 %v1690_v37, %v2093_v59 }
 0x156   : > { %1260 = vst [vmem:[%s2097_s6 + $0xe0] sm:$0xff] %v1228_v40  ;;  %v1229_v43 = vadd.f32 %v1691_v41, %v2093_v59 }
 0x157   : > { %1263 = vst [vmem:[%s2097_s6 + $0xf8] sm:$0xff] %v1231_v42 }
 0x158   : > { %1261 = vst [vmem:[%s2097_s6 + $0xe8] sm:$0xff] %v1229_v43 }
 0x159   : > { %1822 = shalt.err (!%p1819_p5)
}
 0x15a   : > { %s1823_s22 = scalar_lea.hbm %s2162_s11, 4096  ;;  %s1827_s29 = scalar_lea.hbm %s2222_s4, 8192 }
 0x15b   : > { %p1824_p6 = scmp.ne.s32.totalorder %s2162_s11, %s1823_s22  ;;  %p1828_p10 = scmp.lt.u32.totalorder %s2162_s11, %s2222_s4 }
 0x15c   : > { %p1829_p11 = scmp.lt.u32.totalorder %s1827_s29, %s1823_s22  ;;  %p1831_p13 = scmp.lt.u32.totalorder %s1823_s22, %s2162_s11 }
 0x15d   : > { %p1825_p7 = pnand %p1824_p6, %p1957_p4 }
 0x15e   : > { %p1830_p12 = por %p1829_p11, %p1828_p10 }
 0x15f   : > { %p1826_p9 = pneg %p1825_p7 }
 0x160   : > { %p1832_p0 = por %p1831_p13, %p1830_p12 }
 0x162   : > { %p1833_p1 = pnand %p1832_p0, %p1826_p9 }
 0x164   : > { %1836 = shalt.err (!%p1833_p1)
}
 0x165   : > { %s1890_s6 = smov 128   ;;  %s1891_s7 = smov 8  }
 0x166   : > { %1730 = dma.vmem_to_hbm [thread:$0]  (%p1957_p4), %s2164_s8, 4096, %s2162_s11, %s2172_s18, %s1890_s6, %s1890_s6, %s1891_s7  }
 0x167 PF: > { %p1737_p2 = scmp.ge.s32.totalorder %s1887_s20, 2  ;;  %s1295_s9 = sand.u32 1, %s1867_s15  }
 0x168   : > { %s1296_s10 = scalar_lea.sflag [#allocation4], %s1295_s9 }
 0x169   : > { %p1733_p3 = pnand %p1737_p2, %p1964_p8 }
 0x16b   : > { %1862 = dma.done.wait (!%p1733_p3), %s1296_s10, 4096  }
 0x16c   : > { %1864 = vsyncadd (!%p1733_p3), %s1296_s10, 4294963200  ;;  %s17_s20 = sadd.s32 1, %s1887_s20   ;;  %s2225_s15 = smov %s1871_s16 }
 0x16d   : > { %p14_p5 = scmp.ge.s32.totalorder %s17_s20, 4   ;;  %s2226_s16 = smov %s1875_s17 }
 0x16e   : > { %s2227_s17 = smov %s1970_s28  ;;  %s2228_s18 = smov %s1883_s19 }
 0x16f   : > { %s2229_s19 = smov %s2231_s23  ;;  %16 = sbr.rel (!%p14_p5) target bundleno = 4 (0x4), region = 82 }
 0x176   :  { %1301 = vsyncpa [#allocation4], 1 }
 0x177   :  { %1303 = vsyncpa [#allocation4 + $0x1], 1 }

</bundles_post_ra>
